<compile_context>
chip_gen: v6e
topology: v6e:2x2x1
jax: 0.10.0
libtpu: 0.0.40
codegen_flags: <defaults>
</compile_context>

<pallas_src>
import functools
import math

import jax
import jax.numpy as jnp
from jax import lax
from jax.experimental import pallas as pl
from jax.experimental.pallas import tpu as pltpu

LANE = 128      # MXU / vreg lane width
SUBLANE = 8     # f32 sublane height


def _round_up(n, m):
    return ((n + m - 1) // m) * m


# ----------------------------- Pallas kernel --------------------------------
def fcblock_kernel(x_ref, w0_ref, b0_ref, wh_ref, bh_ref, wl_ref, bl_ref, o_ref,
                   *, num_hidden):
    """Fused MLP forward for one row tile.

    x_ref : (TM, IN)      bf16 input rows
    w0_ref: (IN, Hp)      bf16 first-layer weight (transposed)
    b0_ref: (1, Hp)       f32
    wh_ref: (L, Hp, Hp)   bf16 stacked hidden-layer weights (transposed)
    bh_ref: (L, 1, Hp)    f32
    wl_ref: (Hp, OUTp)    bf16 last-layer weight (transposed)
    bl_ref: (1, OUTp)     f32
    o_ref : (TM, OUTp)    f32 output (lane-dense, padded cols sliced in wrapper)

    All matmuls run bf16 on the MXU with f32 accumulation; bias + ReLU in f32.
    """
    # layer0: Linear + ReLU
    h = jnp.dot(x_ref[...], w0_ref[...], preferred_element_type=jnp.float32)
    h = jnp.maximum(h + b0_ref[...], 0.0)

    def hidden_layer(h_f32, w_bf16, b_f32):
        z = jnp.dot(h_f32.astype(w_bf16.dtype), w_bf16,
                    preferred_element_type=jnp.float32)
        return jnp.maximum(z + b_f32, 0.0)

    if num_hidden > 0:
        if num_hidden <= 4:
            # short chain: static unroll keeps everything visible to the scheduler
            for i in range(num_hidden):
                h = hidden_layer(h, wh_ref[i], bh_ref[i])
        else:
            # long chain: fori_loop bounds code size and vreg live ranges
            def body(i, h_carry):
                return hidden_layer(h_carry, wh_ref[i], bh_ref[i])
            h = lax.fori_loop(0, num_hidden, body, h)

    # last layer: Linear + ReLU (outermost_linear=False in the reference module)
    z = jnp.dot(h.astype(wl_ref.dtype), wl_ref[...],
                preferred_element_type=jnp.float32) + bl_ref[...]
    o_ref[...] = jnp.maximum(z, 0.0).astype(o_ref.dtype)


# ------------------------------ wrapper --------------------------------------
def fcblock_forward(coords, params, *, tile_m=256):
    """coords: (..., in_features) f32. Returns (..., out_features) f32."""
    w0, b0, wh, bh, wl, bl = (params[k] for k in ("w0", "b0", "wh", "bh", "wl", "bl"))
    in_features = w0.shape[0]
    hidden_features = w0.shape[1]
    out_features = wl.shape[1]
    num_hidden = wh.shape[0]

    # --- pad hidden/output dims to full MXU lanes, cast weights to bf16 ------
    Hp = _round_up(hidden_features, LANE)
    OUTp = _round_up(out_features, LANE)

    def pad_to(a, shape):
        return jnp.pad(a, [(0, s - d) for d, s in zip(a.shape, shape)])

    w0p = pad_to(w0, (in_features, Hp)).astype(jnp.bfloat16)
    b0p = pad_to(b0, (1, Hp)).astype(jnp.float32)
    if num_hidden > 0:
        whp = pad_to(wh, (num_hidden, Hp, Hp)).astype(jnp.bfloat16)
        bhp = pad_to(bh, (num_hidden, 1, Hp)).astype(jnp.float32)
    else:
        whp = jnp.zeros((1, Hp, Hp), jnp.bfloat16)   # dummy, skipped statically
        bhp = jnp.zeros((1, 1, Hp), jnp.float32)
    wlp = pad_to(wl, (Hp, OUTp)).astype(jnp.bfloat16)
    blp = pad_to(bl, (1, OUTp)).astype(jnp.float32)

    # --- flatten rows, pick row tile, pad rows only when strictly needed -----
    lead_shape = coords.shape[:-1]
    x = coords.reshape(-1, in_features).astype(jnp.bfloat16)
    M = x.shape[0]

    tm = max(SUBLANE, (int(tile_m) // SUBLANE) * SUBLANE)
    tm = min(tm, _round_up(M, SUBLANE))        # don't over-tile tiny inputs
    M_pad = _round_up(M, tm)
    if M_pad != M:
        x = jnp.pad(x, ((0, M_pad - M), (0, 0)))

    grid = (M_pad // tm,)

    # --- VMEM budget + cost estimate -----------------------------------------
    w_bytes = (w0p.size + whp.size + wlp.size) * 2 \
        + (b0p.size + bhp.size + blp.size) * 4
    act_bytes = 4 * tm * Hp * 4                      # live f32 activations/temps
    io_bytes = 2 * tm * in_features * 2 + 2 * tm * OUTp * 4
    vmem_est = 2 * w_bytes + act_bytes + io_bytes    # x2 weights covers fallback
    vmem_limit = int(min(max(2 * vmem_est, 32 * 2**20), 64 * 2**20))

    flops = 2 * M_pad * (in_features * Hp + num_hidden * Hp * Hp + Hp * OUTp)
    bytes_accessed = int(x.size * 2 + w_bytes + M_pad * OUTp * 4)
    cost = pl.CostEstimate(flops=flops, transcendentals=0,
                           bytes_accessed=bytes_accessed)

    kernel = functools.partial(fcblock_kernel, num_hidden=num_hidden)

    def run(single_buffer_weights):
        # Weights/biases have a constant index_map; single-buffering them halves
        # their VMEM footprint (critical on v7x: 64 MiB VMEM per TensorCore).
        wkw = dict(pipeline_mode=pl.Buffered(1)) if single_buffer_weights else {}
        in_specs = [
            pl.BlockSpec((tm, in_features), lambda i: (i, 0)),       # x row tile
            pl.BlockSpec(w0p.shape, lambda i: (0, 0), **wkw),
            pl.BlockSpec(b0p.shape, lambda i: (0, 0), **wkw),
            pl.BlockSpec(whp.shape, lambda i: (0, 0, 0), **wkw),
            pl.BlockSpec(bhp.shape, lambda i: (0, 0, 0), **wkw),
            pl.BlockSpec(wlp.shape, lambda i: (0, 0), **wkw),
            pl.BlockSpec(blp.shape, lambda i: (0, 0), **wkw),
        ]
        return pl.pallas_call(
            kernel,
            out_shape=jax.ShapeDtypeStruct((M_pad, OUTp), jnp.float32),
            grid_spec=pltpu.PrefetchScalarGridSpec(
                num_scalar_prefetch=0,
                grid=grid,
                in_specs=in_specs,
                out_specs=pl.BlockSpec((tm, OUTp), lambda i: (i, 0)),
            ),
            compiler_params=pltpu.CompilerParams(
                dimension_semantics=("parallel",),
                vmem_limit_bytes=vmem_limit,
            ),
            cost_estimate=cost,
        )(x, w0p, b0p, whp, bhp, wlp, blp)

    try:
        out = run(True)
    except Exception:
        # Fallback if this jax build rejects pl.Buffered(1): default buffering.
        out = run(False)

    out = out[:M, :out_features]
    return out.reshape(*lead_shape, out_features)


# --------------------------- parameter init ----------------------------------
def init_fcblock_params(key, in_features, out_features, num_hidden_layers,
                        hidden_features):
    """Mimics the PyTorch module with nonlinearity='relu': weights
    kaiming_normal (std=sqrt(2/fan_in)), biases U(-1/sqrt(fan_in), 1/sqrt(fan_in))
    (nn.Linear default). Stored as (fan_in, fan_out) = PyTorch weight transposed."""
    keys = jax.random.split(key, 6)

    def w_init(k, fan_in, fan_out):
        std = math.sqrt(2.0 / fan_in)
        return std * jax.random.normal(k, (fan_in, fan_out), jnp.float32)

    def b_init(k, fan_in, fan_out):
        bound = 1.0 / math.sqrt(fan_in)
        return jax.random.uniform(k, (1, fan_out), jnp.float32, -bound, bound)

    w0 = w_init(keys[0], in_features, hidden_features)
    b0 = b_init(keys[1], in_features, hidden_features)
    kh_w = jax.random.split(keys[2], max(num_hidden_layers, 1))
    kh_b = jax.random.split(keys[3], max(num_hidden_layers, 1))
    if num_hidden_layers > 0:
        wh = jnp.stack([w_init(kh_w[i], hidden_features, hidden_features)
                        for i in range(num_hidden_layers)], axis=0)
        bh = jnp.stack([b_init(kh_b[i], hidden_features, hidden_features)
                        for i in range(num_hidden_layers)], axis=0)
    else:
        wh = jnp.zeros((0, hidden_features, hidden_features), jnp.float32)
        bh = jnp.zeros((0, 1, hidden_features), jnp.float32)
    wl = w_init(keys[4], hidden_features, out_features)
    bl = b_init(keys[5], hidden_features, out_features)
    return {"w0": w0, "b0": b0, "wh": wh, "bh": bh, "wl": wl, "bl": bl}


# Pure-JAX reference mirroring FCBlock.forward (relu, outermost_linear=False).
# compute_dtype=bf16 matches the kernel's mixed precision (bf16 MXU inputs,
# f32 accumulation / bias / ReLU) for a tight correctness check.
def fcblock_reference(coords, params, compute_dtype=jnp.float32):
    cast = lambda a: a.astype(compute_dtype)
    h = jnp.dot(cast(coords), cast(params["w0"]),
                preferred_element_type=jnp.float32) + params["b0"]
    h = jnp.maximum(h, 0.0)
    for i in range(params["wh"].shape[0]):
        h = jnp.dot(cast(h), cast(params["wh"][i]),
                    preferred_element_type=jnp.float32) + params["bh"][i]
        h = jnp.maximum(h, 0.0)
    z = jnp.dot(cast(h), cast(params["wl"]),
                preferred_element_type=jnp.float32) + params["bl"]
    return jnp.maximum(z, 0.0)


if __name__ == "__main__":
    key = jax.random.PRNGKey(0)
    k_param, k_x = jax.random.split(key)

    # small FCBlock: in=4, hidden=32, out=2, num_hidden_layers=2
    in_features, hidden_features, out_features, num_hidden_layers = 4, 32, 2, 2
    params = init_fcblock_params(k_param, in_features, out_features,
                                 num_hidden_layers, hidden_features)

    # coords: (batch=2, num_points=8, in_features=4)
    coords = jax.random.normal(k_x, (2, 8, in_features), jnp.float32)

    out = fcblock_forward(coords, params)
    out = jax.block_until_ready(out)

    ref = fcblock_reference(coords.reshape(-1, in_features), params,
                            compute_dtype=jnp.bfloat16)
    ref = ref.reshape(2, 8, out_features)
    assert out.shape == (2, 8, out_features)
    assert jnp.allclose(out, ref, atol=1e-3, rtol=1e-3), "mismatch vs reference"

    print("KERNEL_OK")
</pallas_src>

<mosaic_0001>
module attributes {stable_mosaic.version = 11 : i64} {
  func.func @fcblock_kernel(%arg0: i32, %arg1: memref<16x4xbf16, #tpu.memory_space<vmem>>, %arg2: memref<4x128xbf16, #tpu.memory_space<vmem>>, %arg3: memref<1x128xf32, #tpu.memory_space<vmem>>, %arg4: memref<2x128x128xbf16, #tpu.memory_space<vmem>>, %arg5: memref<2x1x128xf32, #tpu.memory_space<vmem>>, %arg6: memref<128x128xbf16, #tpu.memory_space<vmem>>, %arg7: memref<1x128xf32, #tpu.memory_space<vmem>>, %arg8: memref<16x128xf32, #tpu.memory_space<vmem>>) attributes {dimension_semantics = [#tpu.dimension_semantics<parallel>], iteration_bounds = array<i64: 1>, scalar_prefetch = 0 : i64, scratch_operands = 0 : i64, tpu.core_type = #tpu.core_type<tc>, window_params = [{transform_indices = @transform_0, window_bounds = array<i64: 16, 4>}, {pipeline_mode = #tpu.pipeline_mode<synchronous>, transform_indices = @transform_1, window_bounds = array<i64: 4, 128>}, {pipeline_mode = #tpu.pipeline_mode<synchronous>, transform_indices = @transform_2, window_bounds = array<i64: 1, 128>}, {pipeline_mode = #tpu.pipeline_mode<synchronous>, transform_indices = @transform_3, window_bounds = array<i64: 2, 128, 128>}, {pipeline_mode = #tpu.pipeline_mode<synchronous>, transform_indices = @transform_4, window_bounds = array<i64: 2, 1, 128>}, {pipeline_mode = #tpu.pipeline_mode<synchronous>, transform_indices = @transform_5, window_bounds = array<i64: 128, 128>}, {pipeline_mode = #tpu.pipeline_mode<synchronous>, transform_indices = @transform_6, window_bounds = array<i64: 1, 128>}, {transform_indices = @transform_7, window_bounds = array<i64: 16, 128>}]} {
    %c0 = arith.constant 0 : index
    %c0_0 = arith.constant 0 : index
    %0 = vector.load %arg1[%c0, %c0_0] : memref<16x4xbf16, #tpu.memory_space<vmem>>, vector<16x4xbf16>
    %c0_1 = arith.constant 0 : index
    %c0_2 = arith.constant 0 : index
    %1 = vector.load %arg2[%c0_1, %c0_2] : memref<4x128xbf16, #tpu.memory_space<vmem>>, vector<4x128xbf16>
    %cst = arith.constant dense<0.000000e+00> : vector<16x128xf32>
    %2 = tpu.matmul %0, %1, %cst {dimension_numbers = #tpu.dot_dimension_numbers<[1], [0], [0], [1], [0, 0, 1, 1], [], []>} : vector<16x4xbf16>, vector<4x128xbf16>, vector<16x128xf32> -> vector<16x128xf32>
    %c0_3 = arith.constant 0 : index
    %c0_4 = arith.constant 0 : index
    %3 = vector.load %arg3[%c0_3, %c0_4] : memref<1x128xf32, #tpu.memory_space<vmem>>, vector<1x128xf32>
    %4 = vector.broadcast %3 : vector<1x128xf32> to vector<16x128xf32>
    %5 = arith.addf %2, %4 : vector<16x128xf32>
    %cst_5 = arith.constant 0.000000e+00 : f32
    %6 = vector.broadcast %cst_5 : f32 to vector<16x128xf32>
    %7 = arith.maximumf %5, %6 : vector<16x128xf32>
    %c0_6 = arith.constant 0 : index
    %c0_7 = arith.constant 0 : index
    %c0_8 = arith.constant 0 : index
    %8 = vector.load %arg4[%c0_6, %c0_7, %c0_8] : memref<2x128x128xbf16, #tpu.memory_space<vmem>>, vector<1x128x128xbf16>
    %9 = vector.shape_cast %8 : vector<1x128x128xbf16> to vector<128x128xbf16>
    %c0_9 = arith.constant 0 : index
    %c0_10 = arith.constant 0 : index
    %c0_11 = arith.constant 0 : index
    %10 = vector.load %arg5[%c0_9, %c0_10, %c0_11] : memref<2x1x128xf32, #tpu.memory_space<vmem>>, vector<1x1x128xf32>
    %11 = vector.shape_cast %10 : vector<1x1x128xf32> to vector<1x128xf32>
    %12 = arith.truncf %7 : vector<16x128xf32> to vector<16x128xbf16>
    %cst_12 = arith.constant dense<0.000000e+00> : vector<16x128xf32>
    %13 = tpu.matmul %12, %9, %cst_12 {dimension_numbers = #tpu.dot_dimension_numbers<[1], [0], [0], [1], [0, 0, 1, 1], [], []>} : vector<16x128xbf16>, vector<128x128xbf16>, vector<16x128xf32> -> vector<16x128xf32>
    %14 = vector.broadcast %11 : vector<1x128xf32> to vector<16x128xf32>
    %15 = arith.addf %13, %14 : vector<16x128xf32>
    %cst_13 = arith.constant 0.000000e+00 : f32
    %16 = vector.broadcast %cst_13 : f32 to vector<16x128xf32>
    %17 = arith.maximumf %15, %16 : vector<16x128xf32>
    %c1 = arith.constant 1 : index
    %c0_14 = arith.constant 0 : index
    %c0_15 = arith.constant 0 : index
    %18 = vector.load %arg4[%c1, %c0_14, %c0_15] : memref<2x128x128xbf16, #tpu.memory_space<vmem>>, vector<1x128x128xbf16>
    %19 = vector.shape_cast %18 : vector<1x128x128xbf16> to vector<128x128xbf16>
    %c1_16 = arith.constant 1 : index
    %c0_17 = arith.constant 0 : index
    %c0_18 = arith.constant 0 : index
    %20 = vector.load %arg5[%c1_16, %c0_17, %c0_18] : memref<2x1x128xf32, #tpu.memory_space<vmem>>, vector<1x1x128xf32>
    %21 = vector.shape_cast %20 : vector<1x1x128xf32> to vector<1x128xf32>
    %22 = arith.truncf %17 : vector<16x128xf32> to vector<16x128xbf16>
    %cst_19 = arith.constant dense<0.000000e+00> : vector<16x128xf32>
    %23 = tpu.matmul %22, %19, %cst_19 {dimension_numbers = #tpu.dot_dimension_numbers<[1], [0], [0], [1], [0, 0, 1, 1], [], []>} : vector<16x128xbf16>, vector<128x128xbf16>, vector<16x128xf32> -> vector<16x128xf32>
    %24 = vector.broadcast %21 : vector<1x128xf32> to vector<16x128xf32>
    %25 = arith.addf %23, %24 : vector<16x128xf32>
    %cst_20 = arith.constant 0.000000e+00 : f32
    %26 = vector.broadcast %cst_20 : f32 to vector<16x128xf32>
    %27 = arith.maximumf %25, %26 : vector<16x128xf32>
    %28 = arith.truncf %27 : vector<16x128xf32> to vector<16x128xbf16>
    %c0_21 = arith.constant 0 : index
    %c0_22 = arith.constant 0 : index
    %29 = vector.load %arg6[%c0_21, %c0_22] : memref<128x128xbf16, #tpu.memory_space<vmem>>, vector<128x128xbf16>
    %cst_23 = arith.constant dense<0.000000e+00> : vector<16x128xf32>
    %30 = tpu.matmul %28, %29, %cst_23 {dimension_numbers = #tpu.dot_dimension_numbers<[1], [0], [0], [1], [0, 0, 1, 1], [], []>} : vector<16x128xbf16>, vector<128x128xbf16>, vector<16x128xf32> -> vector<16x128xf32>
    %c0_24 = arith.constant 0 : index
    %c0_25 = arith.constant 0 : index
    %31 = vector.load %arg7[%c0_24, %c0_25] : memref<1x128xf32, #tpu.memory_space<vmem>>, vector<1x128xf32>
    %32 = vector.broadcast %31 : vector<1x128xf32> to vector<16x128xf32>
    %33 = arith.addf %30, %32 : vector<16x128xf32>
    %cst_26 = arith.constant 0.000000e+00 : f32
    %34 = vector.broadcast %cst_26 : f32 to vector<16x128xf32>
    %35 = arith.maximumf %33, %34 : vector<16x128xf32>
    %c0_27 = arith.constant 0 : index
    %c0_28 = arith.constant 0 : index
    %36 = vector.load %arg8[%c0_27, %c0_28] : memref<16x128xf32, #tpu.memory_space<vmem>>, vector<16x128xf32>
    tpu.vector_store %arg8[%c0_27, %c0_28], %35 {strides = array<i32>} : memref<16x128xf32, #tpu.memory_space<vmem>>, vector<16x128xf32>,
    return
  }
  func.func @transform_0(%arg0: i32) -> (i32, i32) {
    %c0_i32 = arith.constant 0 : i32
    %c0_i32_0 = arith.constant 0 : i32
    return %arg0, %c0_i32 : i32, i32
  }
  func.func @transform_1(%arg0: i32) -> (i32, i32) {
    %c0_i32 = arith.constant 0 : i32
    %c0_i32_0 = arith.constant 0 : i32
    %c0_i32_1 = arith.constant 0 : i32
    return %c0_i32, %c0_i32_0 : i32, i32
  }
  func.func @transform_2(%arg0: i32) -> (i32, i32) {
    %c0_i32 = arith.constant 0 : i32
    %c0_i32_0 = arith.constant 0 : i32
    %c0_i32_1 = arith.constant 0 : i32
    return %c0_i32, %c0_i32_0 : i32, i32
  }
  func.func @transform_3(%arg0: i32) -> (i32, i32, i32) {
    %c0_i32 = arith.constant 0 : i32
    %c0_i32_0 = arith.constant 0 : i32
    %c0_i32_1 = arith.constant 0 : i32
    %c0_i32_2 = arith.constant 0 : i32
    return %c0_i32, %c0_i32_0, %c0_i32_1 : i32, i32, i32
  }
  func.func @transform_4(%arg0: i32) -> (i32, i32, i32) {
    %c0_i32 = arith.constant 0 : i32
    %c0_i32_0 = arith.constant 0 : i32
    %c0_i32_1 = arith.constant 0 : i32
    %c0_i32_2 = arith.constant 0 : i32
    return %c0_i32, %c0_i32_0, %c0_i32_1 : i32, i32, i32
  }
  func.func @transform_5(%arg0: i32) -> (i32, i32) {
    %c0_i32 = arith.constant 0 : i32
    %c0_i32_0 = arith.constant 0 : i32
    %c0_i32_1 = arith.constant 0 : i32
    return %c0_i32, %c0_i32_0 : i32, i32
  }
  func.func @transform_6(%arg0: i32) -> (i32, i32) {
    %c0_i32 = arith.constant 0 : i32
    %c0_i32_0 = arith.constant 0 : i32
    %c0_i32_1 = arith.constant 0 : i32
    return %c0_i32, %c0_i32_0 : i32, i32
  }
  func.func @transform_7(%arg0: i32) -> (i32, i32) {
    %c0_i32 = arith.constant 0 : i32
    %c0_i32_0 = arith.constant 0 : i32
    return %arg0, %c0_i32 : i32, i32
  }
}

module attributes {stable_mosaic.version = 11 : i64} {
  func.func @fcblock_kernel(%arg0: i32, %arg1: memref<16x4xbf16, #tpu.memory_space<vmem>>, %arg2: memref<4x128xbf16, #tpu.memory_space<vmem>>, %arg3: memref<1x128xf32, #tpu.memory_space<vmem>>, %arg4: memref<2x128x128xbf16, #tpu.memory_space<vmem>>, %arg5: memref<2x1x128xf32, #tpu.memory_space<vmem>>, %arg6: memref<128x128xbf16, #tpu.memory_space<vmem>>, %arg7: memref<1x128xf32, #tpu.memory_space<vmem>>, %arg8: memref<16x128xf32, #tpu.memory_space<vmem>>) attributes {dimension_semantics = [#tpu.dimension_semantics<parallel>], iteration_bounds = array<i64: 1>, scalar_prefetch = 0 : i64, scratch_operands = 0 : i64, tpu.core_type = #tpu.core_type<tc>, window_params = [{transform_indices = @transform_0, window_bounds = array<i64: 16, 4>}, {pipeline_mode = #tpu.pipeline_mode<synchronous>, transform_indices = @transform_1, window_bounds = array<i64: 4, 128>}, {pipeline_mode = #tpu.pipeline_mode<synchronous>, transform_indices = @transform_2, window_bounds = array<i64: 1, 128>}, {pipeline_mode = #tpu.pipeline_mode<synchronous>, transform_indices = @transform_3, window_bounds = array<i64: 2, 128, 128>}, {pipeline_mode = #tpu.pipeline_mode<synchronous>, transform_indices = @transform_4, window_bounds = array<i64: 2, 1, 128>}, {pipeline_mode = #tpu.pipeline_mode<synchronous>, transform_indices = @transform_5, window_bounds = array<i64: 128, 128>}, {pipeline_mode = #tpu.pipeline_mode<synchronous>, transform_indices = @transform_6, window_bounds = array<i64: 1, 128>}, {transform_indices = @transform_7, window_bounds = array<i64: 16, 128>}]} {
    %c0 = arith.constant 0 : index
    %c0_0 = arith.constant 0 : index
    %0 = vector.load %arg1[%c0, %c0_0] : memref<16x4xbf16, #tpu.memory_space<vmem>>, vector<16x4xbf16>
    %c0_1 = arith.constant 0 : index
    %c0_2 = arith.constant 0 : index
    %1 = vector.load %arg2[%c0_1, %c0_2] : memref<4x128xbf16, #tpu.memory_space<vmem>>, vector<4x128xbf16>
    %cst = arith.constant dense<0.000000e+00> : vector<16x128xf32>
    %2 = tpu.matmul %0, %1, %cst {dimension_numbers = #tpu.dot_dimension_numbers<[1], [0], [0], [1], [0, 0, 1, 1], [], []>} : vector<16x4xbf16>, vector<4x128xbf16>, vector<16x128xf32> -> vector<16x128xf32>
    %c0_3 = arith.constant 0 : index
    %c0_4 = arith.constant 0 : index
    %3 = vector.load %arg3[%c0_3, %c0_4] : memref<1x128xf32, #tpu.memory_space<vmem>>, vector<1x128xf32>
    %4 = vector.broadcast %3 : vector<1x128xf32> to vector<16x128xf32>
    %5 = arith.addf %2, %4 : vector<16x128xf32>
    %cst_5 = arith.constant 0.000000e+00 : f32
    %6 = vector.broadcast %cst_5 : f32 to vector<16x128xf32>
    %7 = arith.maximumf %5, %6 : vector<16x128xf32>
    %c0_6 = arith.constant 0 : index
    %c0_7 = arith.constant 0 : index
    %c0_8 = arith.constant 0 : index
    %8 = vector.load %arg4[%c0_6, %c0_7, %c0_8] : memref<2x128x128xbf16, #tpu.memory_space<vmem>>, vector<1x128x128xbf16>
    %9 = vector.shape_cast %8 : vector<1x128x128xbf16> to vector<128x128xbf16>
    %c0_9 = arith.constant 0 : index
    %c0_10 = arith.constant 0 : index
    %c0_11 = arith.constant 0 : index
    %10 = vector.load %arg5[%c0_9, %c0_10, %c0_11] : memref<2x1x128xf32, #tpu.memory_space<vmem>>, vector<1x1x128xf32>
    %11 = vector.shape_cast %10 : vector<1x1x128xf32> to vector<1x128xf32>
    %12 = arith.truncf %7 : vector<16x128xf32> to vector<16x128xbf16>
    %cst_12 = arith.constant dense<0.000000e+00> : vector<16x128xf32>
    %13 = tpu.matmul %12, %9, %cst_12 {dimension_numbers = #tpu.dot_dimension_numbers<[1], [0], [0], [1], [0, 0, 1, 1], [], []>} : vector<16x128xbf16>, vector<128x128xbf16>, vector<16x128xf32> -> vector<16x128xf32>
    %14 = vector.broadcast %11 : vector<1x128xf32> to vector<16x128xf32>
    %15 = arith.addf %13, %14 : vector<16x128xf32>
    %cst_13 = arith.constant 0.000000e+00 : f32
    %16 = vector.broadcast %cst_13 : f32 to vector<16x128xf32>
    %17 = arith.maximumf %15, %16 : vector<16x128xf32>
    %c1 = arith.constant 1 : index
    %c0_14 = arith.constant 0 : index
    %c0_15 = arith.constant 0 : index
    %18 = vector.load %arg4[%c1, %c0_14, %c0_15] : memref<2x128x128xbf16, #tpu.memory_space<vmem>>, vector<1x128x128xbf16>
    %19 = vector.shape_cast %18 : vector<1x128x128xbf16> to vector<128x128xbf16>
    %c1_16 = arith.constant 1 : index
    %c0_17 = arith.constant 0 : index
    %c0_18 = arith.constant 0 : index
    %20 = vector.load %arg5[%c1_16, %c0_17, %c0_18] : memref<2x1x128xf32, #tpu.memory_space<vmem>>, vector<1x1x128xf32>
    %21 = vector.shape_cast %20 : vector<1x1x128xf32> to vector<1x128xf32>
    %22 = arith.truncf %17 : vector<16x128xf32> to vector<16x128xbf16>
    %cst_19 = arith.constant dense<0.000000e+00> : vector<16x128xf32>
    %23 = tpu.matmul %22, %19, %cst_19 {dimension_numbers = #tpu.dot_dimension_numbers<[1], [0], [0], [1], [0, 0, 1, 1], [], []>} : vector<16x128xbf16>, vector<128x128xbf16>, vector<16x128xf32> -> vector<16x128xf32>
    %24 = vector.broadcast %21 : vector<1x128xf32> to vector<16x128xf32>
    %25 = arith.addf %23, %24 : vector<16x128xf32>
    %cst_20 = arith.constant 0.000000e+00 : f32
    %26 = vector.broadcast %cst_20 : f32 to vector<16x128xf32>
    %27 = arith.maximumf %25, %26 : vector<16x128xf32>
    %28 = arith.truncf %27 : vector<16x128xf32> to vector<16x128xbf16>
    %c0_21 = arith.constant 0 : index
    %c0_22 = arith.constant 0 : index
    %29 = vector.load %arg6[%c0_21, %c0_22] : memref<128x128xbf16, #tpu.memory_space<vmem>>, vector<128x128xbf16>
    %cst_23 = arith.constant dense<0.000000e+00> : vector<16x128xf32>
    %30 = tpu.matmul %28, %29, %cst_23 {dimension_numbers = #tpu.dot_dimension_numbers<[1], [0], [0], [1], [0, 0, 1, 1], [], []>} : vector<16x128xbf16>, vector<128x128xbf16>, vector<16x128xf32> -> vector<16x128xf32>
    %c0_24 = arith.constant 0 : index
    %c0_25 = arith.constant 0 : index
    %31 = vector.load %arg7[%c0_24, %c0_25] : memref<1x128xf32, #tpu.memory_space<vmem>>, vector<1x128xf32>
    %32 = vector.broadcast %31 : vector<1x128xf32> to vector<16x128xf32>
    %33 = arith.addf %30, %32 : vector<16x128xf32>
    %cst_26 = arith.constant 0.000000e+00 : f32
    %34 = vector.broadcast %cst_26 : f32 to vector<16x128xf32>
    %35 = arith.maximumf %33, %34 : vector<16x128xf32>
    %c0_27 = arith.constant 0 : index
    %c0_28 = arith.constant 0 : index
    %36 = vector.load %arg8[%c0_27, %c0_28] : memref<16x128xf32, #tpu.memory_space<vmem>>, vector<16x128xf32>
    tpu.vector_store %arg8[%c0_27, %c0_28], %35 {strides = array<i32>} : memref<16x128xf32, #tpu.memory_space<vmem>>, vector<16x128xf32>,
    return
  }
  func.func @transform_0(%arg0: i32) -> (i32, i32) {
    %c0_i32 = arith.constant 0 : i32
    %c0_i32_0 = arith.constant 0 : i32
    return %arg0, %c0_i32 : i32, i32
  }
  func.func @transform_1(%arg0: i32) -> (i32, i32) {
    %c0_i32 = arith.constant 0 : i32
    %c0_i32_0 = arith.constant 0 : i32
    %c0_i32_1 = arith.constant 0 : i32
    return %c0_i32, %c0_i32_0 : i32, i32
  }
  func.func @transform_2(%arg0: i32) -> (i32, i32) {
    %c0_i32 = arith.constant 0 : i32
    %c0_i32_0 = arith.constant 0 : i32
    %c0_i32_1 = arith.constant 0 : i32
    return %c0_i32, %c0_i32_0 : i32, i32
  }
  func.func @transform_3(%arg0: i32) -> (i32, i32, i32) {
    %c0_i32 = arith.constant 0 : i32
    %c0_i32_0 = arith.constant 0 : i32
    %c0_i32_1 = arith.constant 0 : i32
    %c0_i32_2 = arith.constant 0 : i32
    return %c0_i32, %c0_i32_0, %c0_i32_1 : i32, i32, i32
  }
  func.func @transform_4(%arg0: i32) -> (i32, i32, i32) {
    %c0_i32 = arith.constant 0 : i32
    %c0_i32_0 = arith.constant 0 : i32
    %c0_i32_1 = arith.constant 0 : i32
    %c0_i32_2 = arith.constant 0 : i32
    return %c0_i32, %c0_i32_0, %c0_i32_1 : i32, i32, i32
  }
  func.func @transform_5(%arg0: i32) -> (i32, i32) {
    %c0_i32 = arith.constant 0 : i32
    %c0_i32_0 = arith.constant 0 : i32
    %c0_i32_1 = arith.constant 0 : i32
    return %c0_i32, %c0_i32_0 : i32, i32
  }
  func.func @transform_6(%arg0: i32) -> (i32, i32) {
    %c0_i32 = arith.constant 0 : i32
    %c0_i32_0 = arith.constant 0 : i32
    %c0_i32_1 = arith.constant 0 : i32
    return %c0_i32, %c0_i32_0 : i32, i32
  }
  func.func @transform_7(%arg0: i32) -> (i32, i32) {
    %c0_i32 = arith.constant 0 : i32
    %c0_i32_0 = arith.constant 0 : i32
    return %arg0, %c0_i32 : i32, i32
  }
}

</mosaic_0001>

<bundles_post_ra>
// kernel: tpu_custom_call.1
= control target key start
LH: loop header
LB: loop body
LE: loop exit
PB: predicated region body
PF: predicated region fallthrough
CT: control target
= control target key end

     0   :  { %12 = vsyncpa [#allocation3], 0  ;;  %s824_s0 = inlined_call_operand.vmem [shape: bf16[16,4], index: 0, kind: input, shape index: {}]   ;;  %s825_s1 = inlined_call_operand.vmem [shape: bf16[4,128], index: 1, kind: input, shape index: {}]   ;;  %s826_s2 = inlined_call_operand.vmem [shape: f32[1,128], index: 2, kind: input, shape index: {}]   ;;  %s827_s3 = inlined_call_operand.hbm [shape: bf16[2,128,128], index: 3, kind: input, shape index: {}]   ;;  %s828_s4 = inlined_call_operand.vmem [shape: f32[2,1,128], index: 4, kind: input, shape index: {}]   ;;  %s829_s5 = inlined_call_operand.hbm [shape: bf16[128,128], index: 5, kind: input, shape index: {}]   ;;  %s830_s6 = inlined_call_operand.vmem [shape: f32[1,128], index: 6, kind: input, shape index: {}]   ;;  %s831_s7 = inlined_call_operand.hbm [shape: f32[16,128], index: 7, kind: output, shape index: {}]  }
   0x1   :  { %13 = vsyncpa [#allocation6], 0 }
   0x2   :  { %14 = vsyncpa [#allocation4], 0  ;;  %s715_s24 = smov [#allocation2]  }
   0x3   :  { %s26_s25 = sshll.u32 %s715_s24, 4  ;;  %s27_s25 = int_to_ptr.vmem [resolvable:$true] %s26_s25 }
   0x4   :  { %s657_s26 = scalar_lea.vmem %s27_s25, 2048  ;;  %p662_p1 = scmp.lt.s32.totalorder %s27_s25, %s27_s25 }
   0x5   :  { %p658_p0 = scmp.ne.s32.totalorder %s27_s25, %s657_s26  ;;  %p663_p2 = scmp.lt.s32.totalorder %s657_s26, %s657_s26 }
   0x7   :  { %p664_p3 = por %p663_p2, %p662_p1 }
   0x9   :  { %p665_p4 = pnand %p664_p3, %p658_p0 }
   0xb   :  { %668 = shalt.err (!%p665_p4)
}
   0xc   :  { %s716_s27 = smov 64   ;;  %s717_s28 = smov 4  }
   0xd   :  { %32 = dma.hbm_to_vmem [thread:$0]  %s827_s3, 2048, %s27_s25, [#allocation3], %s716_s27, %s716_s27, %s717_s28  }
   0xe   :  { %s718_s8 = smov [#allocation5]  }
   0xf   :  { %s40_s9 = sshll.u32 %s718_s8, 4  ;;  %s41_s9 = int_to_ptr.vmem [resolvable:$true] %s40_s9 }
  0x10   :  { %s677_s10 = scalar_lea.vmem %s41_s9, 1024  ;;  %p682_p6 = scmp.lt.s32.totalorder %s41_s9, %s41_s9 }
  0x11   :  { %p678_p5 = scmp.ne.s32.totalorder %s41_s9, %s677_s10  ;;  %p683_p7 = scmp.lt.s32.totalorder %s677_s10, %s677_s10 }
  0x13   :  { %p684_p8 = por %p683_p7, %p682_p6 }
  0x15   :  { %p685_p9 = pnand %p684_p8, %p678_p5 }
  0x17   :  { %688 = shalt.err (!%p685_p9)
}
  0x18   :  { %46 = dma.hbm_to_vmem [thread:$0]  %s829_s5, 1024, %s41_s9, [#allocation6], %s716_s27, %s716_s27, %s717_s28  }
  0x19   :  { %709 = dma.done.wait [#allocation3], 2048  }
  0x1a   :  { %710 = vsyncadd [#allocation3], 4294965248 }
  0x1b   :  { %711 = dma.done.wait [#allocation6], 1024  }
  0x1c   :  { %712 = vsyncadd [#allocation6], 4294966272  ;;  %v719_v0 = vmov 0.0   ;;  %vm720_vm0 = vmmov 0   ;;  %vm75_vm1 = vcmask 1041408   ;;  %v624_v3 = vld [vmem:[%s824_s0] sm:$0xff]  }
  0x1d   :  { %549 = vmatprep.subr.bf16.mxu0 %v719_v0  ;;  %551 = vmatprep.mubr.msk.bf16.mxu0 %vm720_vm0, %v719_v0  ;;  %v58_v1 = vld [vmem:[%s825_s1] sm:$0x3]  ;;  %vm71_vm2 = vcmask 31744   ;;  %v625_v4 = vld [vmem:[#allocation2 + $0x38] sm:$0xff]   ;;  %v626_v5 = vld [vmem:[#allocation2 + $0x30] sm:$0xff]   ;;  %s721_s20 = smov [#allocation7]  }
  0x1e   :  { %555 = vmatprep.subr.bf16.mxu1 %v719_v0  ;;  %571 = vmatprep.mubr.msk.bf16.mxu1 %vm720_vm0, %v719_v0  ;;  %v77_v2 = vsel %vm75_vm1, %v58_v1, 0  ;;  %v627_v6 = vld [vmem:[#allocation2 + $0x28] sm:$0xff]   ;;  %v628_v7 = vld [vmem:[#allocation2 + $0x20] sm:$0xff]   ;;  %v629_v8 = vld [vmem:[#allocation2 + $0x18] sm:$0xff]  }
  0x1f   :  { %550 = vmatpush3.bf16.msra.mxu0 %v77_v2  ;;  %556 = vmatpush3.bf16.msra.mxu1 %v625_v4  ;;  %v630_v9 = vld [vmem:[#allocation2 + $0x10] sm:$0xff]   ;;  %v631_v10 = vld [vmem:[#allocation2 + $0x8] sm:$0xff]   ;;  %v632_v11 = vld [vmem:[#allocation2] sm:$0xff]  }
  0x20   :  { %575 = vmatprep.subr.bf16.mxu0 %v719_v0  ;;  %557 = vmatprep.subr.bf16.mxu1 %v719_v0  ;;  %v633_v12 = vld [vmem:[#allocation2 + $0x78] sm:$0xff]   ;;  %v634_v13 = vld [vmem:[#allocation2 + $0x70] sm:$0xff]   ;;  %v635_v14 = vld [vmem:[#allocation2 + $0x68] sm:$0xff]  }
  0x21   :  { %v636_v15 = vld [vmem:[#allocation2 + $0x60] sm:$0xff]   ;;  %v637_v16 = vld [vmem:[#allocation2 + $0x58] sm:$0xff]   ;;  %v638_v27 = vld [vmem:[#allocation2 + $0x50] sm:$0xff]  }
  0x22   :  { %552 = vmatmul.mubr.msk.bf16.vlgmr.msra.gmra.mxu0 %vm71_vm2, %v624_v3  ;;  %v489_v17 = vld [vmem:[%s826_s2] ss:$0 sm:$0xff]  ;;  %v639_v28 = vld [vmem:[#allocation2 + $0x48] sm:$0xff]   ;;  %v641_v30 = vld [vmem:[#allocation5 + $0x38] sm:$0xff]  }
  0x23   :  { %591 = vmatprep.mubr.msk.bf16.mxu0 %vm720_vm0, %v719_v0  ;;  %558 = vmatpush3.bf16.msra.mxu1 %v626_v5  ;;  %v640_v29 = vld [vmem:[#allocation2 + $0x40] sm:$0xff]   ;;  %v642_v31 = vld [vmem:[#allocation5 + $0x30] sm:$0xff]   ;;  %v643_v32 = vld [vmem:[#allocation5 + $0x28] sm:$0xff]  }
  0x24   :  { %559 = vmatprep.subr.bf16.mxu1 %v719_v0  ;;  %576 = vmatpush3.bf16.msra.mxu0 %v633_v12  ;;  %v644_v33 = vld [vmem:[#allocation5 + $0x20] sm:$0xff]   ;;  %v645_v34 = vld [vmem:[#allocation5 + $0x18] sm:$0xff]   ;;  %v646_v45 = vld [vmem:[#allocation5 + $0x10] sm:$0xff]  }
  0x25   :  { %577 = vmatprep.subr.bf16.mxu0 %v719_v0  ;;  %v492_v35 = vld [vmem:[%s828_s4] ss:$0 sm:$0xff]  ;;  %v647_v46 = vld [vmem:[#allocation5 + $0x8] sm:$0xff]   ;;  %v502_v48 = vld [vmem:[%s828_s4 + $0x1] ss:$0 sm:$0xff]  ;;  %s476_s4 = sshll.u32 %s721_s20, 4  ;;  %s477_s4 = int_to_ptr.vmem [resolvable:$true] %s476_s4 }
  0x26   :  { %v648_v47 = vld [vmem:[#allocation5] sm:$0xff]   ;;  %s689_s21 = scalar_lea.vmem %s477_s4, 256  ;;  %p694_p11 = scmp.lt.s32.totalorder %s477_s4, %s477_s4 }
  0x27   :  { %560 = vmatpush3.bf16.msra.mxu1 %v627_v6  ;;  %v511_v58 = vld [vmem:[%s830_s6] ss:$0 sm:$0xff]  ;;  %p690_p10 = scmp.ne.s32.totalorder %s477_s4, %s689_s21  ;;  %p695_p12 = scmp.lt.s32.totalorder %s689_s21, %s689_s21 }
  0x28   :  { %561 = vmatprep.subr.bf16.mxu1 %v719_v0  ;;  %578 = vmatpush3.bf16.msra.mxu0 %v634_v13 }
  0x29   :  { %579 = vmatprep.subr.bf16.mxu0 %v719_v0  ;;  %p696_p13 = por %p695_p12, %p694_p11 }
  0x2b   :  { %562 = vmatpush3.bf16.msra.mxu1 %v628_v7  ;;  %p697_p0 = pnand %p696_p13, %p690_p10 }
  0x2c   :  { %563 = vmatprep.subr.bf16.mxu1 %v719_v0  ;;  %580 = vmatpush3.bf16.msra.mxu0 %v635_v14 }
  0x2d   :  { %581 = vmatprep.subr.bf16.mxu0 %v719_v0 }
  0x2f   :  { %564 = vmatpush3.bf16.msra.mxu1 %v629_v8 }
  0x30   :  { %565 = vmatprep.subr.bf16.mxu1 %v719_v0  ;;  %582 = vmatpush3.bf16.msra.mxu0 %v636_v15 }
  0x31   :  { %583 = vmatprep.subr.bf16.mxu0 %v719_v0 }
  0x33   :  { %566 = vmatpush3.bf16.msra.mxu1 %v630_v9 }
  0x34   :  { %567 = vmatprep.subr.bf16.mxu1 %v719_v0  ;;  %584 = vmatpush3.bf16.msra.mxu0 %v637_v16 }
  0x35   :  { %585 = vmatprep.subr.bf16.mxu0 %v719_v0 }
  0x37   :  { %568 = vmatpush3.bf16.msra.mxu1 %v631_v10 }
  0x38   :  { %569 = vmatprep.subr.bf16.mxu1 %v719_v0  ;;  %586 = vmatpush3.bf16.msra.mxu0 %v638_v27 }
  0x39   :  { %587 = vmatprep.subr.bf16.mxu0 %v719_v0 }
  0x3b   :  { %570 = vmatpush3.bf16.msra.mxu1 %v632_v11 }
  0x3c   :  { %595 = vmatprep.subr.bf16.mxu1 %v719_v0  ;;  %588 = vmatpush3.bf16.msra.mxu0 %v639_v28 }
  0x3d   :  { %589 = vmatprep.subr.bf16.mxu0 %v719_v0 }
  0x40   :  { %590 = vmatpush3.bf16.msra.mxu0 %v640_v29 }
  0xe2   :  { %v113_v18 = vpop.f32.mrf.mxu0 }
  0xe3   :  { %v114_v20 = vadd.f32 %v489_v17, %v113_v18 }
  0xe4   :  { %v553_v19 = vpop.f32.mrf.mxu0 }
  0xe5   :  { %v120_v24 = vmax.f32 %v114_v20, 0.0 }
  0xe6   :  { %v116_v21 = vpop.f32.mrf.mxu0 }
  0xe7   :  { %v117_v22 = vadd.f32 %v489_v17, %v116_v21 }
  0xe8   :  { %v554_v23 = vpop.f32.mrf.mxu0 }
  0xe9   :  { %v121_v25 = vmax.f32 %v117_v22, 0.0 }
  0xeb   :  { %v139_v26 = vpack.c.bf16 %v121_v25, %v120_v24 }
  0xed   :  { %572 = vmatmul.mubr.bf16.vlgmr.msra.gmra.mxu1 %v139_v26 }
  0xee   :  { %611 = vmatprep.mubr.msk.bf16.mxu1 %vm720_vm0, %v719_v0  ;;  %596 = vmatpush3.bf16.msra.mxu1 %v641_v30 }
  0xef   :  { %597 = vmatprep.subr.bf16.mxu1 %v719_v0 }
  0xf2   :  { %598 = vmatpush3.bf16.msra.mxu1 %v642_v31 }
  0xf3   :  { %599 = vmatprep.subr.bf16.mxu1 %v719_v0 }
  0xf6   :  { %600 = vmatpush3.bf16.msra.mxu1 %v643_v32 }
  0xf7   :  { %601 = vmatprep.subr.bf16.mxu1 %v719_v0 }
  0xfa   :  { %602 = vmatpush3.bf16.msra.mxu1 %v644_v33 }
  0xfb   :  { %603 = vmatprep.subr.bf16.mxu1 %v719_v0 }
  0xfe   :  { %604 = vmatpush3.bf16.msra.mxu1 %v645_v34 }
  0xff   :  { %605 = vmatprep.subr.bf16.mxu1 %v719_v0 }
 0x102   :  { %606 = vmatpush3.bf16.msra.mxu1 %v646_v45 }
 0x103   :  { %607 = vmatprep.subr.bf16.mxu1 %v719_v0 }
 0x106   :  { %608 = vmatpush3.bf16.msra.mxu1 %v647_v46 }
 0x107   :  { %609 = vmatprep.subr.bf16.mxu1 %v719_v0 }
 0x10a   :  { %610 = vmatpush3.bf16.msra.mxu1 %v648_v47 }
 0x1ad   :  { %v228_v36 = vpop.f32.mrf.mxu1 }
 0x1ae   :  { %v229_v38 = vadd.f32 %v492_v35, %v228_v36 }
 0x1af   :  { %v573_v37 = vpop.f32.mrf.mxu1 }
 0x1b0   :  { %v235_v42 = vmax.f32 %v229_v38, 0.0 }
 0x1b1   :  { %v231_v39 = vpop.f32.mrf.mxu1 }
 0x1b2   :  { %v232_v40 = vadd.f32 %v492_v35, %v231_v39 }
 0x1b3   :  { %v574_v41 = vpop.f32.mrf.mxu1 }
 0x1b4   :  { %v236_v43 = vmax.f32 %v232_v40, 0.0 }
 0x1b6   :  { %v256_v44 = vpack.c.bf16 %v236_v43, %v235_v42 }
 0x1b8   :  { %592 = vmatmul.mubr.bf16.vlgmr.msra.gmra.mxu0 %v256_v44 }
 0x278   :  { %v345_v49 = vpop.f32.mrf.mxu0 }
 0x279   :  { %v346_v51 = vadd.f32 %v502_v48, %v345_v49 }
 0x27a   :  { %v593_v50 = vpop.f32.mrf.mxu0 }
 0x27b   :  { %v352_v55 = vmax.f32 %v346_v51, 0.0 }
 0x27c   :  { %v348_v52 = vpop.f32.mrf.mxu0 }
 0x27d   :  { %v349_v53 = vadd.f32 %v502_v48, %v348_v52 }
 0x27e   :  { %v594_v54 = vpop.f32.mrf.mxu0 }
 0x27f   :  { %v353_v56 = vmax.f32 %v349_v53, 0.0 }
 0x281   :  { %v354_v57 = vpack.c.bf16 %v353_v56, %v352_v55 }
 0x283   :  { %612 = vmatmul.mubr.bf16.vlgmr.msra.gmra.mxu1 %v354_v57 }
 0x343   :  { %v460_v59 = vpop.f32.mrf.mxu1 }
 0x344   :  { %v461_v60 = vadd.f32 %v511_v58, %v460_v59 }
 0x345   :  { %v613_v61 = vpop.f32.mrf.mxu1 }
 0x346   :  { %v467_v62 = vmax.f32 %v461_v60, 0.0 }
 0x347   :  { %v463_v63 = vpop.f32.mrf.mxu1 }
 0x348   :  { %469 = vst [vmem:[#allocation7] sm:$0xff] %v467_v62  ;;  %v464_v0 = vadd.f32 %v511_v58, %v463_v63 }
 0x349   :  { %v614_v1 = vpop.f32.mrf.mxu1 }
 0x34a   :  { %v468_v2 = vmax.f32 %v464_v0, 0.0 }
 0x34c   :  { %470 = vst [vmem:[#allocation7 + $0x8] sm:$0xff] %v468_v2 }
 0x34d   :  { %700 = shalt.err (!%p697_p0)
}
 0x34e   :  { %s722_s6 = smov 128   ;;  %s723_s22 = smov 8  }
 0x34f   :  { %482 = dma.vmem_to_hbm [thread:$0]  %s477_s4, 256, %s831_s7, [#allocation4], %s722_s6, %s722_s6, %s723_s22  }
 0x350   :  { %713 = dma.done.wait [#allocation4], 256  }
 0x351   :  { %714 = vsyncadd [#allocation4], 4294967040 }
 0x352   :  { %486 = vsyncpa [#allocation3], 1 }
 0x353   :  { %487 = vsyncpa [#allocation6], 1 }
 0x354   :  { %488 = vsyncpa [#allocation4], 1 }

// kernel: tpu_custom_call.1
= control target key start
LH: loop header
LB: loop body
LE: loop exit
PB: predicated region body
PF: predicated region fallthrough
CT: control target
= control target key end

     0   :  { %12 = vsyncpa [#allocation3], 0  ;;  %s824_s0 = inlined_call_operand.vmem [shape: bf16[16,4], index: 0, kind: input, shape index: {}]   ;;  %s825_s1 = inlined_call_operand.vmem [shape: bf16[4,128], index: 1, kind: input, shape index: {}]   ;;  %s826_s2 = inlined_call_operand.vmem [shape: f32[1,128], index: 2, kind: input, shape index: {}]   ;;  %s827_s3 = inlined_call_operand.hbm [shape: bf16[2,128,128], index: 3, kind: input, shape index: {}]   ;;  %s828_s4 = inlined_call_operand.vmem [shape: f32[2,1,128], index: 4, kind: input, shape index: {}]   ;;  %s829_s5 = inlined_call_operand.hbm [shape: bf16[128,128], index: 5, kind: input, shape index: {}]   ;;  %s830_s6 = inlined_call_operand.vmem [shape: f32[1,128], index: 6, kind: input, shape index: {}]   ;;  %s831_s7 = inlined_call_operand.hbm [shape: f32[16,128], index: 7, kind: output, shape index: {}]  }
   0x1   :  { %13 = vsyncpa [#allocation6], 0 }
   0x2   :  { %14 = vsyncpa [#allocation4], 0  ;;  %s715_s24 = smov [#allocation2]  }
   0x3   :  { %s26_s25 = sshll.u32 %s715_s24, 4  ;;  %s27_s25 = int_to_ptr.vmem [resolvable:$true] %s26_s25 }
   0x4   :  { %s657_s26 = scalar_lea.vmem %s27_s25, 2048  ;;  %p662_p1 = scmp.lt.s32.totalorder %s27_s25, %s27_s25 }
   0x5   :  { %p658_p0 = scmp.ne.s32.totalorder %s27_s25, %s657_s26  ;;  %p663_p2 = scmp.lt.s32.totalorder %s657_s26, %s657_s26 }
   0x7   :  { %p664_p3 = por %p663_p2, %p662_p1 }
   0x9   :  { %p665_p4 = pnand %p664_p3, %p658_p0 }
   0xb   :  { %668 = shalt.err (!%p665_p4)
}
   0xc   :  { %s716_s27 = smov 64   ;;  %s717_s28 = smov 4  }
   0xd   :  { %32 = dma.hbm_to_vmem [thread:$0]  %s827_s3, 2048, %s27_s25, [#allocation3], %s716_s27, %s716_s27, %s717_s28  }
   0xe   :  { %s718_s8 = smov [#allocation5]  }
   0xf   :  { %s40_s9 = sshll.u32 %s718_s8, 4  ;;  %s41_s9 = int_to_ptr.vmem [resolvable:$true] %s40_s9 }
  0x10   :  { %s677_s10 = scalar_lea.vmem %s41_s9, 1024  ;;  %p682_p6 = scmp.lt.s32.totalorder %s41_s9, %s41_s9 }
  0x11   :  { %p678_p5 = scmp.ne.s32.totalorder %s41_s9, %s677_s10  ;;  %p683_p7 = scmp.lt.s32.totalorder %s677_s10, %s677_s10 }
  0x13   :  { %p684_p8 = por %p683_p7, %p682_p6 }
  0x15   :  { %p685_p9 = pnand %p684_p8, %p678_p5 }
  0x17   :  { %688 = shalt.err (!%p685_p9)
}
  0x18   :  { %46 = dma.hbm_to_vmem [thread:$0]  %s829_s5, 1024, %s41_s9, [#allocation6], %s716_s27, %s716_s27, %s717_s28  }
  0x19   :  { %709 = dma.done.wait [#allocation3], 2048  }
  0x1a   :  { %710 = vsyncadd [#allocation3], 4294965248 }
  0x1b   :  { %711 = dma.done.wait [#allocation6], 1024  }
  0x1c   :  { %712 = vsyncadd [#allocation6], 4294966272  ;;  %v719_v0 = vmov 0.0   ;;  %vm720_vm0 = vmmov 0   ;;  %vm75_vm1 = vcmask 1041408   ;;  %v624_v3 = vld [vmem:[%s824_s0] sm:$0xff]  }
  0x1d   :  { %549 = vmatprep.subr.bf16.mxu0 %v719_v0  ;;  %551 = vmatprep.mubr.msk.bf16.mxu0 %vm720_vm0, %v719_v0  ;;  %v58_v1 = vld [vmem:[%s825_s1] sm:$0x3]  ;;  %vm71_vm2 = vcmask 31744   ;;  %v625_v4 = vld [vmem:[#allocation2 + $0x38] sm:$0xff]   ;;  %v626_v5 = vld [vmem:[#allocation2 + $0x30] sm:$0xff]   ;;  %s721_s20 = smov [#allocation7]  }
  0x1e   :  { %555 = vmatprep.subr.bf16.mxu1 %v719_v0  ;;  %571 = vmatprep.mubr.msk.bf16.mxu1 %vm720_vm0, %v719_v0  ;;  %v77_v2 = vsel %vm75_vm1, %v58_v1, 0  ;;  %v627_v6 = vld [vmem:[#allocation2 + $0x28] sm:$0xff]   ;;  %v628_v7 = vld [vmem:[#allocation2 + $0x20] sm:$0xff]   ;;  %v629_v8 = vld [vmem:[#allocation2 + $0x18] sm:$0xff]  }
  0x1f   :  { %550 = vmatpush3.bf16.msra.mxu0 %v77_v2  ;;  %556 = vmatpush3.bf16.msra.mxu1 %v625_v4  ;;  %v630_v9 = vld [vmem:[#allocation2 + $0x10] sm:$0xff]   ;;  %v631_v10 = vld [vmem:[#allocation2 + $0x8] sm:$0xff]   ;;  %v632_v11 = vld [vmem:[#allocation2] sm:$0xff]  }
  0x20   :  { %575 = vmatprep.subr.bf16.mxu0 %v719_v0  ;;  %557 = vmatprep.subr.bf16.mxu1 %v719_v0  ;;  %v633_v12 = vld [vmem:[#allocation2 + $0x78] sm:$0xff]   ;;  %v634_v13 = vld [vmem:[#allocation2 + $0x70] sm:$0xff]   ;;  %v635_v14 = vld [vmem:[#allocation2 + $0x68] sm:$0xff]  }
  0x21   :  { %v636_v15 = vld [vmem:[#allocation2 + $0x60] sm:$0xff]   ;;  %v637_v16 = vld [vmem:[#allocation2 + $0x58] sm:$0xff]   ;;  %v638_v27 = vld [vmem:[#allocation2 + $0x50] sm:$0xff]  }
  0x22   :  { %552 = vmatmul.mubr.msk.bf16.vlgmr.msra.gmra.mxu0 %vm71_vm2, %v624_v3  ;;  %v489_v17 = vld [vmem:[%s826_s2] ss:$0 sm:$0xff]  ;;  %v639_v28 = vld [vmem:[#allocation2 + $0x48] sm:$0xff]   ;;  %v641_v30 = vld [vmem:[#allocation5 + $0x38] sm:$0xff]  }
  0x23   :  { %591 = vmatprep.mubr.msk.bf16.mxu0 %vm720_vm0, %v719_v0  ;;  %558 = vmatpush3.bf16.msra.mxu1 %v626_v5  ;;  %v640_v29 = vld [vmem:[#allocation2 + $0x40] sm:$0xff]   ;;  %v642_v31 = vld [vmem:[#allocation5 + $0x30] sm:$0xff]   ;;  %v643_v32 = vld [vmem:[#allocation5 + $0x28] sm:$0xff]  }
  0x24   :  { %559 = vmatprep.subr.bf16.mxu1 %v719_v0  ;;  %576 = vmatpush3.bf16.msra.mxu0 %v633_v12  ;;  %v644_v33 = vld [vmem:[#allocation5 + $0x20] sm:$0xff]   ;;  %v645_v34 = vld [vmem:[#allocation5 + $0x18] sm:$0xff]   ;;  %v646_v45 = vld [vmem:[#allocation5 + $0x10] sm:$0xff]  }
  0x25   :  { %577 = vmatprep.subr.bf16.mxu0 %v719_v0  ;;  %v492_v35 = vld [vmem:[%s828_s4] ss:$0 sm:$0xff]  ;;  %v647_v46 = vld [vmem:[#allocation5 + $0x8] sm:$0xff]   ;;  %v502_v48 = vld [vmem:[%s828_s4 + $0x1] ss:$0 sm:$0xff]  ;;  %s476_s4 = sshll.u32 %s721_s20, 4  ;;  %s477_s4 = int_to_ptr.vmem [resolvable:$true] %s476_s4 }
  0x26   :  { %v648_v47 = vld [vmem:[#allocation5] sm:$0xff]   ;;  %s689_s21 = scalar_lea.vmem %s477_s4, 256  ;;  %p694_p11 = scmp.lt.s32.totalorder %s477_s4, %s477_s4 }
  0x27   :  { %560 = vmatpush3.bf16.msra.mxu1 %v627_v6  ;;  %v511_v58 = vld [vmem:[%s830_s6] ss:$0 sm:$0xff]  ;;  %p690_p10 = scmp.ne.s32.totalorder %s477_s4, %s689_s21  ;;  %p695_p12 = scmp.lt.s32.totalorder %s689_s21, %s689_s21 }
  0x28   :  { %561 = vmatprep.subr.bf16.mxu1 %v719_v0  ;;  %578 = vmatpush3.bf16.msra.mxu0 %v634_v13 }
  0x29   :  { %579 = vmatprep.subr.bf16.mxu0 %v719_v0  ;;  %p696_p13 = por %p695_p12, %p694_p11 }
  0x2b   :  { %562 = vmatpush3.bf16.msra.mxu1 %v628_v7  ;;  %p697_p0 = pnand %p696_p13, %p690_p10 }
  0x2c   :  { %563 = vmatprep.subr.bf16.mxu1 %v719_v0  ;;  %580 = vmatpush3.bf16.msra.mxu0 %v635_v14 }
  0x2d   :  { %581 = vmatprep.subr.bf16.mxu0 %v719_v0 }
  0x2f   :  { %564 = vmatpush3.bf16.msra.mxu1 %v629_v8 }
  0x30   :  { %565 = vmatprep.subr.bf16.mxu1 %v719_v0  ;;  %582 = vmatpush3.bf16.msra.mxu0 %v636_v15 }
  0x31   :  { %583 = vmatprep.subr.bf16.mxu0 %v719_v0 }
  0x33   :  { %566 = vmatpush3.bf16.msra.mxu1 %v630_v9 }
  0x34   :  { %567 = vmatprep.subr.bf16.mxu1 %v719_v0  ;;  %584 = vmatpush3.bf16.msra.mxu0 %v637_v16 }
  0x35   :  { %585 = vmatprep.subr.bf16.mxu0 %v719_v0 }
  0x37   :  { %568 = vmatpush3.bf16.msra.mxu1 %v631_v10 }
  0x38   :  { %569 = vmatprep.subr.bf16.mxu1 %v719_v0  ;;  %586 = vmatpush3.bf16.msra.mxu0 %v638_v27 }
  0x39   :  { %587 = vmatprep.subr.bf16.mxu0 %v719_v0 }
  0x3b   :  { %570 = vmatpush3.bf16.msra.mxu1 %v632_v11 }
  0x3c   :  { %595 = vmatprep.subr.bf16.mxu1 %v719_v0  ;;  %588 = vmatpush3.bf16.msra.mxu0 %v639_v28 }
  0x3d   :  { %589 = vmatprep.subr.bf16.mxu0 %v719_v0 }
  0x40   :  { %590 = vmatpush3.bf16.msra.mxu0 %v640_v29 }
  0xe2   :  { %v113_v18 = vpop.f32.mrf.mxu0 }
  0xe3   :  { %v114_v20 = vadd.f32 %v489_v17, %v113_v18 }
  0xe4   :  { %v553_v19 = vpop.f32.mrf.mxu0 }
  0xe5   :  { %v120_v24 = vmax.f32 %v114_v20, 0.0 }
  0xe6   :  { %v116_v21 = vpop.f32.mrf.mxu0 }
  0xe7   :  { %v117_v22 = vadd.f32 %v489_v17, %v116_v21 }
  0xe8   :  { %v554_v23 = vpop.f32.mrf.mxu0 }
  0xe9   :  { %v121_v25 = vmax.f32 %v117_v22, 0.0 }
  0xeb   :  { %v139_v26 = vpack.c.bf16 %v121_v25, %v120_v24 }
  0xed   :  { %572 = vmatmul.mubr.bf16.vlgmr.msra.gmra.mxu1 %v139_v26 }
  0xee   :  { %611 = vmatprep.mubr.msk.bf16.mxu1 %vm720_vm0, %v719_v0  ;;  %596 = vmatpush3.bf16.msra.mxu1 %v641_v30 }
  0xef   :  { %597 = vmatprep.subr.bf16.mxu1 %v719_v0 }
  0xf2   :  { %598 = vmatpush3.bf16.msra.mxu1 %v642_v31 }
  0xf3   :  { %599 = vmatprep.subr.bf16.mxu1 %v719_v0 }
  0xf6   :  { %600 = vmatpush3.bf16.msra.mxu1 %v643_v32 }
  0xf7   :  { %601 = vmatprep.subr.bf16.mxu1 %v719_v0 }
  0xfa   :  { %602 = vmatpush3.bf16.msra.mxu1 %v644_v33 }
  0xfb   :  { %603 = vmatprep.subr.bf16.mxu1 %v719_v0 }
  0xfe   :  { %604 = vmatpush3.bf16.msra.mxu1 %v645_v34 }
  0xff   :  { %605 = vmatprep.subr.bf16.mxu1 %v719_v0 }
 0x102   :  { %606 = vmatpush3.bf16.msra.mxu1 %v646_v45 }
 0x103   :  { %607 = vmatprep.subr.bf16.mxu1 %v719_v0 }
 0x106   :  { %608 = vmatpush3.bf16.msra.mxu1 %v647_v46 }
 0x107   :  { %609 = vmatprep.subr.bf16.mxu1 %v719_v0 }
 0x10a   :  { %610 = vmatpush3.bf16.msra.mxu1 %v648_v47 }
 0x1ad   :  { %v228_v36 = vpop.f32.mrf.mxu1 }
 0x1ae   :  { %v229_v38 = vadd.f32 %v492_v35, %v228_v36 }
 0x1af   :  { %v573_v37 = vpop.f32.mrf.mxu1 }
 0x1b0   :  { %v235_v42 = vmax.f32 %v229_v38, 0.0 }
 0x1b1   :  { %v231_v39 = vpop.f32.mrf.mxu1 }
 0x1b2   :  { %v232_v40 = vadd.f32 %v492_v35, %v231_v39 }
 0x1b3   :  { %v574_v41 = vpop.f32.mrf.mxu1 }
 0x1b4   :  { %v236_v43 = vmax.f32 %v232_v40, 0.0 }
 0x1b6   :  { %v256_v44 = vpack.c.bf16 %v236_v43, %v235_v42 }
 0x1b8   :  { %592 = vmatmul.mubr.bf16.vlgmr.msra.gmra.mxu0 %v256_v44 }
 0x278   :  { %v345_v49 = vpop.f32.mrf.mxu0 }
 0x279   :  { %v346_v51 = vadd.f32 %v502_v48, %v345_v49 }
 0x27a   :  { %v593_v50 = vpop.f32.mrf.mxu0 }
 0x27b   :  { %v352_v55 = vmax.f32 %v346_v51, 0.0 }
 0x27c   :  { %v348_v52 = vpop.f32.mrf.mxu0 }
 0x27d   :  { %v349_v53 = vadd.f32 %v502_v48, %v348_v52 }
 0x27e   :  { %v594_v54 = vpop.f32.mrf.mxu0 }
 0x27f   :  { %v353_v56 = vmax.f32 %v349_v53, 0.0 }
 0x281   :  { %v354_v57 = vpack.c.bf16 %v353_v56, %v352_v55 }
 0x283   :  { %612 = vmatmul.mubr.bf16.vlgmr.msra.gmra.mxu1 %v354_v57 }
 0x343   :  { %v460_v59 = vpop.f32.mrf.mxu1 }
 0x344   :  { %v461_v60 = vadd.f32 %v511_v58, %v460_v59 }
 0x345   :  { %v613_v61 = vpop.f32.mrf.mxu1 }
 0x346   :  { %v467_v62 = vmax.f32 %v461_v60, 0.0 }
 0x347   :  { %v463_v63 = vpop.f32.mrf.mxu1 }
 0x348   :  { %469 = vst [vmem:[#allocation7] sm:$0xff] %v467_v62  ;;  %v464_v0 = vadd.f32 %v511_v58, %v463_v63 }
 0x349   :  { %v614_v1 = vpop.f32.mrf.mxu1 }
 0x34a   :  { %v468_v2 = vmax.f32 %v464_v0, 0.0 }
 0x34c   :  { %470 = vst [vmem:[#allocation7 + $0x8] sm:$0xff] %v468_v2 }
 0x34d   :  { %700 = shalt.err (!%p697_p0)
}
 0x34e   :  { %s722_s6 = smov 128   ;;  %s723_s22 = smov 8  }
 0x34f   :  { %482 = dma.vmem_to_hbm [thread:$0]  %s477_s4, 256, %s831_s7, [#allocation4], %s722_s6, %s722_s6, %s723_s22  }
 0x350   :  { %713 = dma.done.wait [#allocation4], 256  }
 0x351   :  { %714 = vsyncadd [#allocation4], 4294967040 }
 0x352   :  { %486 = vsyncpa [#allocation3], 1 }
 0x353   :  { %487 = vsyncpa [#allocation6], 1 }
 0x354   :  { %488 = vsyncpa [#allocation4], 1 }

</bundles_post_ra>
